<compile_context>
chip_gen: v7x
topology: tpu7x:2x2x1
jax: 0.10.0
libtpu: 0.0.40
codegen_flags: <defaults>
</compile_context>

<pallas_src>
import functools
import math

import jax
import jax.numpy as jnp
from jax.experimental import pallas as pl
from jax.experimental.pallas import tpu as pltpu


# ----------------------------------------------------------------------------
# Tile helpers (largest aligned tile <= pref that divides n)
# ----------------------------------------------------------------------------

def _tile_lane(n, pref):
    for t in (pref, 512, 256, 128):
        if t <= n and n % t == 0:
            return t
    return n


def _tile_sublane(n, pref):
    # TODO(synk): for very large awkward n this falls back to the full dim;
    # pad + mask instead if that ever exceeds the VMEM budget.
    for t in (pref, 512, 256, 128, 64, 32, 16, 8):
        if t <= n and n % t == 0:
            return t
    return n


# ----------------------------------------------------------------------------
# 1) Tiled matmul kernel (fused QKV projection)
# ----------------------------------------------------------------------------

def _matmul_kernel(x_ref, w_ref, o_ref, acc_ref):
    @pl.when(pl.program_id(2) == 0)
    def _():
        acc_ref[...] = jnp.zeros_like(acc_ref)

    acc_ref[...] += jnp.dot(
        x_ref[...], w_ref[...], preferred_element_type=jnp.float32
    )

    @pl.when(pl.program_id(2) == pl.num_programs(2) - 1)
    def _():
        o_ref[...] = acc_ref[...].astype(o_ref.dtype)


def matmul_pallas(x, w_t, out_dtype, tm_pref=256, tn_pref=256, tk_pref=512):
    """out = x @ w_t ; x: (M, K) bf16, w_t: (K, N) bf16 (pre-transposed)."""
    M, K = x.shape
    K2, N = w_t.shape
    assert K == K2
    tm = _tile_sublane(M, tm_pref)
    tn = _tile_lane(N, tn_pref)
    tk = _tile_lane(K, tk_pref)
    return pl.pallas_call(
        _matmul_kernel,
        out_shape=jax.ShapeDtypeStruct((M, N), out_dtype),
        grid=(M // tm, N // tn, K // tk),
        in_specs=[
            pl.BlockSpec((tm, tk), lambda i, j, k: (i, k)),
            pl.BlockSpec((tk, tn), lambda i, j, k: (k, j)),
        ],
        out_specs=pl.BlockSpec((tm, tn), lambda i, j, k: (i, j)),
        scratch_shapes=[pltpu.VMEM((tm, tn), jnp.float32)],
        compiler_params=pltpu.CompilerParams(
            dimension_semantics=("parallel", "parallel", "arbitrary")
        ),
    )(x, w_t)


# ----------------------------------------------------------------------------
# 2) Fused RoPE (Q, K) + head-major transpose (Q, K, V) kernel
#    reads (B, S, H, D), writes (B, H, S, D) -- no XLA transposes needed.
# ----------------------------------------------------------------------------

def _rope_transpose_kernel(q_ref, k_ref, v_ref, cos_ref, sin_ref,
                           qo_ref, ko_ref, vo_ref):
    cos = cos_ref[...]                       # (ts, D) f32, half-split layout
    sin = sin_ref[...]
    half = cos.shape[-1] // 2

    def rotate(x2d):                         # (ts, D) f32
        # half-split layout: rotation partner is a half-width lane roll
        return x2d * cos + pltpu.roll(x2d, shift=half, axis=1) * sin

    # head-major stores (the S<->H transpose stays inside VMEM)
    for h in range(qo_ref.shape[0]):
        qh = q_ref[:, h, :].astype(jnp.float32)
        qo_ref[h, :, :] = rotate(qh).astype(qo_ref.dtype)
    for h in range(ko_ref.shape[0]):
        kh = k_ref[:, h, :].astype(jnp.float32)
        ko_ref[h, :, :] = rotate(kh).astype(ko_ref.dtype)
        vo_ref[h, :, :] = v_ref[:, h, :]


def rope_and_transpose_pallas(xq, xk, xv, cos_hs, sin_hs, ts_pref=256):
    """xq: (B,S,Hq,D), xk/xv: (B,S,Hkv,D) -> head-major (B,H,S,D) outputs."""
    B, S, Hq, D = xq.shape
    Hkv = xk.shape[2]
    ts = _tile_sublane(S, ts_pref)
    return pl.pallas_call(
        _rope_transpose_kernel,
        out_shape=(
            jax.ShapeDtypeStruct((B, Hq, S, D), xq.dtype),
            jax.ShapeDtypeStruct((B, Hkv, S, D), xk.dtype),
            jax.ShapeDtypeStruct((B, Hkv, S, D), xv.dtype),
        ),
        grid=(B, S // ts),
        in_specs=[
            pl.BlockSpec((None, ts, Hq, D), lambda b, si: (b, si, 0, 0)),
            pl.BlockSpec((None, ts, Hkv, D), lambda b, si: (b, si, 0, 0)),
            pl.BlockSpec((None, ts, Hkv, D), lambda b, si: (b, si, 0, 0)),
            pl.BlockSpec((ts, D), lambda b, si: (si, 0)),
            pl.BlockSpec((ts, D), lambda b, si: (si, 0)),
        ],
        out_specs=(
            pl.BlockSpec((None, Hq, ts, D), lambda b, si: (b, 0, si, 0)),
            pl.BlockSpec((None, Hkv, ts, D), lambda b, si: (b, 0, si, 0)),
            pl.BlockSpec((None, Hkv, ts, D), lambda b, si: (b, 0, si, 0)),
        ),
        compiler_params=pltpu.CompilerParams(
            dimension_semantics=("parallel", "parallel")
        ),
    )(xq, xk, xv, cos_hs, sin_hs)


# ----------------------------------------------------------------------------
# 3) KV-cache writeback kernel: only the S new rows are DMA'd into the cache.
#    input_output_aliases keeps the rest of the cache; under jit with buffer
#    donation this is a true in-place O(S) write (eager falls back to a copy).
# ----------------------------------------------------------------------------

def _cache_writeback_kernel(k_ref, v_ref, ck_in, cv_in, ck_out, cv_out, sems,
                            *, start_pos, seq_len):
    del ck_in, cv_in
    b = pl.program_id(0)
    h = pl.program_id(1)
    copy_k = pltpu.make_async_copy(
        k_ref, ck_out.at[b, h, pl.ds(start_pos, seq_len), :], sems.at[0]
    )
    copy_v = pltpu.make_async_copy(
        v_ref, cv_out.at[b, h, pl.ds(start_pos, seq_len), :], sems.at[1]
    )
    copy_k.start()
    copy_v.start()
    copy_k.wait()
    copy_v.wait()


def cache_writeback_pallas(k_new, v_new, cache_k, cache_v, start_pos):
    """k_new/v_new: (B, Hkv, S, D); cache_*: (MB, Hkv, MS, D) (aliased out)."""
    B, Hkv, S, D = k_new.shape
    kernel = functools.partial(
        _cache_writeback_kernel, start_pos=start_pos, seq_len=S
    )
    return pl.pallas_call(
        kernel,
        out_shape=(
            jax.ShapeDtypeStruct(cache_k.shape, cache_k.dtype),
            jax.ShapeDtypeStruct(cache_v.shape, cache_v.dtype),
        ),
        grid=(B, Hkv),
        in_specs=[
            pl.BlockSpec((None, None, S, D), lambda b, h: (b, h, 0, 0)),
            pl.BlockSpec((None, None, S, D), lambda b, h: (b, h, 0, 0)),
            pl.BlockSpec(memory_space=pl.ANY),
            pl.BlockSpec(memory_space=pl.ANY),
        ],
        out_specs=(
            pl.BlockSpec(memory_space=pl.ANY),
            pl.BlockSpec(memory_space=pl.ANY),
        ),
        scratch_shapes=[pltpu.SemaphoreType.DMA((2,))],
        input_output_aliases={2: 0, 3: 1},
        compiler_params=pltpu.CompilerParams(
            dimension_semantics=("arbitrary", "arbitrary")
        ),
    )(k_new, v_new, cache_k, cache_v)


# ----------------------------------------------------------------------------
# 4) Flash attention (online softmax).  Q rows of one GQA group are merged on
#    the row axis, so K/V blocks are streamed once per KV head.  The full
#    cache is read in place; the active prefix length is enforced by masking.
# ----------------------------------------------------------------------------

def _flash_kernel(q_ref, k_ref, v_ref, o_ref, m_sc, l_sc, acc_sc,
                  *, kv_len, tkv):
    ki = pl.program_id(3)

    @pl.when(ki == 0)
    def _():
        m_sc[...] = jnp.full_like(m_sc, -jnp.inf)
        l_sc[...] = jnp.zeros_like(l_sc)
        acc_sc[...] = jnp.zeros_like(acc_sc)

    q = q_ref[...]                               # (trow, D) bf16 (scale in wq)
    k = k_ref[...]                               # (tkv, D) bf16
    s = jax.lax.dot_general(
        q, k, (((1,), (1,)), ((), ())), preferred_element_type=jnp.float32
    )                                            # (trow, tkv) f32
    if kv_len % tkv != 0:
        # mask cache slots beyond the active prefix length
        col = ki * tkv + jax.lax.broadcasted_iota(jnp.int32, s.shape, 1)
        s = jnp.where(col < kv_len, s, -1e30)

    m_prev = m_sc[...]
    m_new = jnp.maximum(m_prev, jnp.max(s, axis=-1, keepdims=True))
    alpha = jnp.exp(m_prev - m_new)
    p = jnp.exp(s - m_new)
    l_sc[...] = alpha * l_sc[...] + jnp.sum(p, axis=-1, keepdims=True)
    acc_sc[...] = alpha * acc_sc[...] + jnp.dot(
        p.astype(v_ref.dtype), v_ref[...], preferred_element_type=jnp.float32
    )
    m_sc[...] = m_new

    @pl.when(ki == pl.num_programs(3) - 1)
    def _():
        inv_l = pl.reciprocal(l_sc[...], approx=True)
        o_ref[...] = (acc_sc[...] * inv_l).astype(o_ref.dtype)


def flash_attention_pallas(q_merged, cache_k, cache_v, kv_len,
                           trow_pref=256, tkv_pref=512):
    """q_merged: (B, Hkv, n_rep*S, D); cache_*: (MB, Hkv, MS, D)."""
    B, Hkv, QR, D = q_merged.shape
    _, _, MS, _ = cache_k.shape
    trow = _tile_sublane(QR, trow_pref)
    tkv = _tile_sublane(MS, tkv_pref)       # tiles max_seq_len, masked by kv_len
    n_kv_blocks = pl.cdiv(kv_len, tkv)
    kernel = functools.partial(_flash_kernel, kv_len=kv_len, tkv=tkv)
    return pl.pallas_call(
        kernel,
        out_shape=jax.ShapeDtypeStruct((B, Hkv, QR, D), q_merged.dtype),
        grid=(B, Hkv, QR // trow, n_kv_blocks),
        in_specs=[
            pl.BlockSpec((None, None, trow, D), lambda b, g, r, k: (b, g, r, 0)),
            pl.BlockSpec((None, None, tkv, D), lambda b, g, r, k: (b, g, k, 0)),
            pl.BlockSpec((None, None, tkv, D), lambda b, g, r, k: (b, g, k, 0)),
        ],
        out_specs=pl.BlockSpec(
            (None, None, trow, D), lambda b, g, r, k: (b, g, r, 0)
        ),
        scratch_shapes=[
            pltpu.VMEM((trow, 1), jnp.float32),   # running max
            pltpu.VMEM((trow, 1), jnp.float32),   # running sum
            pltpu.VMEM((trow, D), jnp.float32),   # output accumulator
        ],
        compiler_params=pltpu.CompilerParams(
            dimension_semantics=("parallel", "parallel", "parallel", "arbitrary")
        ),
    )(q_merged, cache_k, cache_v)


# ----------------------------------------------------------------------------
# 5) wo projection that reads the attention output head-major (no transpose):
#    the head axis is the (last, "arbitrary") reduction axis of the grid.
# ----------------------------------------------------------------------------

def _wo_kernel(a_ref, w_ref, o_ref, acc_ref):
    @pl.when(pl.program_id(3) == 0)
    def _():
        acc_ref[...] = jnp.zeros_like(acc_ref)

    acc_ref[...] += jnp.dot(
        a_ref[...], w_ref[...], preferred_element_type=jnp.float32
    )

    @pl.when(pl.program_id(3) == pl.num_programs(3) - 1)
    def _():
        o_ref[...] = acc_ref[...].astype(o_ref.dtype)


def wo_proj_pallas(attn_hm, wo_hm, out_dtype, tm_pref=256, tn_pref=256):
    """attn_hm: (B, Hq, S, D) bf16; wo_hm: (Hq, D, dim) bf16 -> (B, S, dim)."""
    B, Hq, S, D = attn_hm.shape
    dim = wo_hm.shape[2]
    tms = _tile_sublane(S, tm_pref)
    tn = _tile_lane(dim, tn_pref)
    return pl.pallas_call(
        _wo_kernel,
        out_shape=jax.ShapeDtypeStruct((B, S, dim), out_dtype),
        grid=(B, S // tms, dim // tn, Hq),
        in_specs=[
            pl.BlockSpec((None, None, tms, D), lambda b, si, j, h: (b, h, si, 0)),
            pl.BlockSpec((None, D, tn), lambda b, si, j, h: (h, 0, j)),
        ],
        out_specs=pl.BlockSpec((None, tms, tn), lambda b, si, j, h: (b, si, j)),
        scratch_shapes=[pltpu.VMEM((tms, tn), jnp.float32)],
        compiler_params=pltpu.CompilerParams(
            dimension_semantics=("parallel", "parallel", "parallel", "arbitrary")
        ),
    )(attn_hm, wo_hm)


# ----------------------------------------------------------------------------
# SelfAttention module (Pallas forward)
# ----------------------------------------------------------------------------

def repeat_kv(x, n_rep):
    """Reference-only helper (the Pallas path never materializes repeated KV)."""
    if n_rep == 1:
        return x
    b, s, kvh, d = x.shape
    return jnp.broadcast_to(
        x[:, :, :, None, :], (b, s, kvh, n_rep, d)
    ).reshape(b, s, kvh * n_rep, d)


class SelfAttentionPallas:
    def __init__(self, dim, n_heads, n_kv_heads, max_batch_size, max_seq_len, key):
        self.dim = dim
        self.n_kv_heads = n_kv_heads
        self.n_heads_q = n_heads
        self.n_rep = n_heads // n_kv_heads
        self.head_dim = dim // n_heads
        D = self.head_dim

        def init_linear(k, out_f, in_f):
            bound = 1.0 / math.sqrt(in_f)
            return jax.random.uniform(
                k, (out_f, in_f), jnp.float32, minval=-bound, maxval=bound
            )

        k1, k2, k3, k4 = jax.random.split(key, 4)
        # Master f32 weights, torch-style (out_features, in_features).
        self.wq = init_linear(k1, n_heads * D, dim)
        self.wk = init_linear(k2, n_kv_heads * D, dim)
        self.wv = init_linear(k3, n_kv_heads * D, dim)
        self.wo = init_linear(k4, dim, n_heads * D)

        # --- one-time kernel-side weight prep ---
        # Per-head half-split permutation: [even feats | odd feats].  Applying
        # the same permutation to Q and K leaves q.k scores unchanged and
        # turns interleaved RoPE into elementwise math + a half-width roll.
        perm_head = jnp.concatenate(
            [jnp.arange(0, D, 2, dtype=jnp.int32),
             jnp.arange(1, D, 2, dtype=jnp.int32)]
        )
        perm_q = (jnp.arange(n_heads, dtype=jnp.int32)[:, None] * D
                  + perm_head[None, :]).reshape(-1)
        perm_k = (jnp.arange(n_kv_heads, dtype=jnp.int32)[:, None] * D
                  + perm_head[None, :]).reshape(-1)
        wq_p = (self.wq / math.sqrt(D))[perm_q]   # fold 1/sqrt(D) into wq
        wk_p = self.wk[perm_k]
        # Fused, pre-transposed (K, Nq + 2*Nkv) bf16 QKV weight.
        self.w_qkv_t = jnp.concatenate(
            [wq_p.T, wk_p.T, self.wv.T], axis=1
        ).astype(jnp.bfloat16)
        # wo arranged head-major for the transpose-free output projection.
        self.wo_hm = self.wo.T.reshape(n_heads, D, dim).astype(jnp.bfloat16)

        # KV cache: (batch, kv_head, seq, head_dim) bf16 -> read directly by
        # the attention kernel (no transpose, no repeat_kv, half the bytes).
        self.cache_k = jnp.zeros(
            (max_batch_size, n_kv_heads, max_seq_len, D), jnp.bfloat16
        )
        self.cache_v = jnp.zeros(
            (max_batch_size, n_kv_heads, max_seq_len, D), jnp.bfloat16
        )

    def __call__(self, x, start_pos, freqs_complex):
        B, S, dim = x.shape
        D, Hq, Hkv = self.head_dim, self.n_heads_q, self.n_kv_heads
        n_rep = self.n_rep
        Nq, Nkv = Hq * D, Hkv * D

        # ---- fused QKV projection (one tiled, pipelined bf16 matmul) ----
        x2d = x.reshape(B * S, dim).astype(jnp.bfloat16)
        xqkv = matmul_pallas(x2d, self.w_qkv_t, out_dtype=jnp.bfloat16)

        # Per-head views in the matmul's natural (B, S, H, D) layout
        # (plain slices; no transposes).
        xq = xqkv[:, :Nq].reshape(B, S, Hq, D)
        xk = xqkv[:, Nq:Nq + Nkv].reshape(B, S, Hkv, D)
        xv = xqkv[:, Nq + Nkv:].reshape(B, S, Hkv, D)

        # ---- RoPE tables (half-split layout) for positions [start_pos, +S) ----
        c = jnp.real(freqs_complex).astype(jnp.float32)          # (S, D/2)
        s = jnp.imag(freqs_complex).astype(jnp.float32)
        cos_hs = jnp.concatenate([c, c], axis=-1)                # (S, D)
        sin_hs = jnp.concatenate([-s, s], axis=-1)               # (S, D)

        # ---- one kernel: RoPE(Q,K) + head-major transpose of Q,K,V ----
        q_hm, k_hm, v_hm = rope_and_transpose_pallas(xq, xk, xv, cos_hs, sin_hs)

        # ---- KV cache writeback: only the S new rows are DMA'd in place ----
        self.cache_k, self.cache_v = cache_writeback_pallas(
            k_hm, v_hm, self.cache_k, self.cache_v, start_pos
        )

        # ---- flash attention over the cache (GQA group merged on rows) ----
        # TODO(synk): no causal mask, matching the reference module.
        T = start_pos + S
        q_merged = q_hm.reshape(B, Hkv, n_rep * S, D)       # free reshape
        out = flash_attention_pallas(q_merged, self.cache_k, self.cache_v, T)
        out_hm = out.reshape(B, Hq, S, D)                    # free reshape

        # ---- output projection straight from head-major layout ----
        y = wo_proj_pallas(out_hm, self.wo_hm, out_dtype=jnp.bfloat16)
        return y


# ----------------------------------------------------------------------------
# Pure-JAX reference (mirrors the PyTorch module + the kernel's bf16 rounding)
# ----------------------------------------------------------------------------

def _q(a):
    return a.astype(jnp.bfloat16).astype(jnp.float32)


def reference_forward(attn, x, start_pos, freqs_complex):
    B, S, dim = x.shape
    D, Hq, Hkv = attn.head_dim, attn.n_heads_q, attn.n_kv_heads
    n_rep = attn.n_rep

    xq = _q(_q(x) @ _q(attn.wq).T).reshape(B, S, Hq, D)
    xk = _q(_q(x) @ _q(attn.wk).T).reshape(B, S, Hkv, D)
    xv = _q(_q(x) @ _q(attn.wv).T).reshape(B, S, Hkv, D)

    def rope(t):
        tr = t.reshape(*t.shape[:-1], D // 2, 2)
        tc = jax.lax.complex(tr[..., 0], tr[..., 1])
        tro = tc * freqs_complex[None, :, None, :]
        return jnp.stack([jnp.real(tro), jnp.imag(tro)], axis=-1).reshape(t.shape)

    xq = _q(rope(xq))
    xk = _q(rope(xk))

    pad = jnp.zeros((B, start_pos, Hkv, D), jnp.float32)
    keys = repeat_kv(jnp.concatenate([pad, xk], axis=1), n_rep)
    values = repeat_kv(jnp.concatenate([pad, xv], axis=1), n_rep)

    q = jnp.transpose(xq, (0, 2, 1, 3))
    k = jnp.transpose(keys, (0, 2, 1, 3))
    v = jnp.transpose(values, (0, 2, 1, 3))

    scores = jnp.einsum("bhsd,bhtd->bhst", q, k) / math.sqrt(D)
    p = _q(jax.nn.softmax(scores, axis=-1))
    out = jnp.einsum("bhst,bhtd->bhsd", p, v)
    out = _q(jnp.transpose(out, (0, 2, 1, 3)).reshape(B, S, Hq * D))
    return _q(out @ _q(attn.wo).T)


# ----------------------------------------------------------------------------
# Main
# ----------------------------------------------------------------------------

if __name__ == "__main__":
    # Small, LLaMA-like config (keeps the real head_dim=128 of the spec).
    dim = 256
    n_heads = 2
    n_kv_heads = 1          # exercises GQA (n_rep = 2) without repeat_kv
    head_dim = dim // n_heads
    B, S = 2, 8
    max_batch_size, max_seq_len = 2, 16
    start_pos = 4           # exercises the KV-cache path (T = 12, masked tail)

    key = jax.random.PRNGKey(0)
    k_w, k_x = jax.random.split(key)

    attn = SelfAttentionPallas(
        dim, n_heads, n_kv_heads, max_batch_size, max_seq_len, k_w
    )
    x = jax.random.normal(k_x, (B, S, dim), jnp.float32)

    # Rotary frequencies for positions [start_pos, start_pos + S)
    theta = 10000.0 ** (
        -jnp.arange(0, head_dim, 2, dtype=jnp.float32) / head_dim
    )
    positions = jnp.arange(start_pos, start_pos + S, dtype=jnp.float32)
    freqs = jnp.outer(positions, theta)                        # (S, head_dim/2)
    freqs_complex = jnp.exp(1j * freqs).astype(jnp.complex64)  # (S, head_dim/2)

    out = attn(x, start_pos, freqs_complex)
    out = jax.block_until_ready(out)

    ref = reference_forward(attn, x, start_pos, freqs_complex)
    assert out.shape == (B, S, dim)
    out_f32 = out.astype(jnp.float32)
    max_err = float(jnp.max(jnp.abs(out_f32 - ref)))
    assert jnp.allclose(out_f32, ref, rtol=2e-2, atol=2e-2), (
        f"mismatch vs reference, max abs err {max_err}"
    )

    print("KERNEL_OK")
</pallas_src>

<mosaic_0001>
module attributes {stable_mosaic.version = 11 : i64} {
  func.func @_matmul_kernel(%arg0: i32, %arg1: i32, %arg2: i32, %arg3: memref<16x256xbf16, #tpu.memory_space<vmem>>, %arg4: memref<256x256xbf16, #tpu.memory_space<vmem>>, %arg5: memref<16x256xbf16, #tpu.memory_space<vmem>>, %arg6: memref<16x256xf32, #tpu.memory_space<vmem>>) attributes {dimension_semantics = [#tpu.dimension_semantics<parallel>, #tpu.dimension_semantics<parallel>, #tpu.dimension_semantics<arbitrary>], iteration_bounds = array<i64: 1, 2, 1>, scalar_prefetch = 0 : i64, scratch_operands = 1 : i64, tpu.core_type = #tpu.core_type<tc>, window_params = [{transform_indices = @transform_0, window_bounds = array<i64: 16, 256>}, {transform_indices = @transform_1, window_bounds = array<i64: 256, 256>}, {transform_indices = @transform_2, window_bounds = array<i64: 16, 256>}]} {
    %c0_i32 = arith.constant 0 : i32
    %0 = arith.cmpi eq, %arg2, %c0_i32 : i32
    %1 = arith.extui %0 : i1 to i32
    %c0_i32_0 = arith.constant 0 : i32
    %2 = arith.cmpi ne, %1, %c0_i32_0 : i32
    scf.if %2 {
      %cst_10 = arith.constant 0.000000e+00 : f32
      %12 = vector.broadcast %cst_10 : f32 to vector<16x256xf32>
      %c0_11 = arith.constant 0 : index
      %c0_12 = arith.constant 0 : index
      %13 = vector.load %arg6[%c0_11, %c0_12] : memref<16x256xf32, #tpu.memory_space<vmem>>, vector<16x256xf32>
      tpu.vector_store %arg6[%c0_11, %c0_12], %12 {strides = array<i32>} : memref<16x256xf32, #tpu.memory_space<vmem>>, vector<16x256xf32>,
    } else {
    }
    %c0 = arith.constant 0 : index
    %c0_1 = arith.constant 0 : index
    %3 = vector.load %arg6[%c0, %c0_1] : memref<16x256xf32, #tpu.memory_space<vmem>>, vector<16x256xf32>
    %c0_2 = arith.constant 0 : index
    %c0_3 = arith.constant 0 : index
    %4 = vector.load %arg3[%c0_2, %c0_3] : memref<16x256xbf16, #tpu.memory_space<vmem>>, vector<16x256xbf16>
    %c0_4 = arith.constant 0 : index
    %c0_5 = arith.constant 0 : index
    %5 = vector.load %arg4[%c0_4, %c0_5] : memref<256x256xbf16, #tpu.memory_space<vmem>>, vector<256x256xbf16>
    %cst = arith.constant dense<0.000000e+00> : vector<16x256xf32>
    %6 = tpu.matmul %4, %5, %cst {dimension_numbers = #tpu.dot_dimension_numbers<[1], [0], [0], [1], [0, 0, 1, 1], [], []>} : vector<16x256xbf16>, vector<256x256xbf16>, vector<16x256xf32> -> vector<16x256xf32>
    %7 = arith.addf %3, %6 : vector<16x256xf32>
    %c0_6 = arith.constant 0 : index
    %c0_7 = arith.constant 0 : index
    %8 = vector.load %arg6[%c0_6, %c0_7] : memref<16x256xf32, #tpu.memory_space<vmem>>, vector<16x256xf32>
    tpu.vector_store %arg6[%c0_6, %c0_7], %7 {strides = array<i32>} : memref<16x256xf32, #tpu.memory_space<vmem>>, vector<16x256xf32>,
    %c0_i32_8 = arith.constant 0 : i32
    %9 = arith.cmpi eq, %arg2, %c0_i32_8 : i32
    %10 = arith.extui %9 : i1 to i32
    %c0_i32_9 = arith.constant 0 : i32
    %11 = arith.cmpi ne, %10, %c0_i32_9 : i32
    scf.if %11 {
      %c0_10 = arith.constant 0 : index
      %c0_11 = arith.constant 0 : index
      %12 = vector.load %arg6[%c0_10, %c0_11] : memref<16x256xf32, #tpu.memory_space<vmem>>, vector<16x256xf32>
      %13 = arith.truncf %12 : vector<16x256xf32> to vector<16x256xbf16>
      %c0_12 = arith.constant 0 : index
      %c0_13 = arith.constant 0 : index
      %14 = vector.load %arg5[%c0_12, %c0_13] : memref<16x256xbf16, #tpu.memory_space<vmem>>, vector<16x256xbf16>
      tpu.vector_store %arg5[%c0_12, %c0_13], %13 {strides = array<i32>} : memref<16x256xbf16, #tpu.memory_space<vmem>>, vector<16x256xbf16>,
    } else {
    }
    return
  }
  func.func @transform_0(%arg0: i32, %arg1: i32, %arg2: i32) -> (i32, i32) {
    %c0_i32 = arith.constant 0 : i32
    return %arg0, %arg2 : i32, i32
  }
  func.func @transform_1(%arg0: i32, %arg1: i32, %arg2: i32) -> (i32, i32) {
    %c0_i32 = arith.constant 0 : i32
    return %arg2, %arg1 : i32, i32
  }
  func.func @transform_2(%arg0: i32, %arg1: i32, %arg2: i32) -> (i32, i32) {
    %c0_i32 = arith.constant 0 : i32
    return %arg0, %arg1 : i32, i32
  }
}

</mosaic_0001>

<bundles_post_ra>
// kernel: tpu_custom_call.1
= control target key start
LH: loop header
LB: loop body
LE: loop exit
PB: predicated region body
PF: predicated region fallthrough
CT: control target
= control target key end

     0   :  { %7 = vsyncpa [#allocation4], 0  ;;  %s1251_s0 = inlined_call_operand.hbm [shape: bf16[16,256], index: 0, kind: input, shape index: {}]   ;;  %s1252_s1 = inlined_call_operand.hbm [shape: bf16[256,512], index: 1, kind: input, shape index: {}]   ;;  %s1253_s2 = inlined_call_operand.hbm [shape: bf16[16,512], index: 2, kind: output, shape index: {}]  }
   0x1   :  { %8 = vsyncpa [#allocation7], 0 }
   0x2   :  { %10 = vsyncpa [#allocation7 + $0x1], 0 }
   0x3   :  { %11 = vsyncpa [#allocation5], 0 }
   0x4   :  { %13 = vsyncpa [#allocation5 + $0x1], 0  ;;  %s991_s9 = smov 0   ;;  %s993_s10 = smov 0  }
   0x5   :  { %s995_s11 = smov 0   ;;  %s997_s12 = smov 0  }
   0x6   :  { %s999_s13 = smov 0   ;;  %s1001_s14 = smov 0  }
   0x7 LB: > { %s634_s15 = sadd.s32 4294967295, %s965_s14   ;;  %s635_s16 = sadd.s32 4294967294, %s965_s14   ;;  %s965_s14 = sphi %s1001_s14, %s19_s14   ;;  %s961_s13 = sphi %s999_s13, %s1279_s13   ;;  %s957_s12 = sphi %s997_s12, %s1278_s12   ;;  %s953_s11 = sphi %s995_s11, %s1277_s11   ;;  %s949_s10 = sphi %s993_s10, %s1276_s10   ;;  %s945_s9 = sphi %s991_s9, %s1275_s9  }
   0x8   : > { %p82_p0 = scmp.ne.s32.totalorder %s953_s11, %s949_s10  ;;  %p83_p1 = scmp.eq.s32.totalorder %s965_s14, 0 }
   0x9   : > { %p88_p2 = scmp.ne.s32.totalorder %s949_s10, %s945_s9  ;;  %p1028_p3 = scmp.eq.s32.totalorder %s634_s15, 0 }
   0xa   : > { %p1032_p4 = por %p83_p1, %p82_p0  ;;  %p114_p5 = scmp.eq.s32.totalorder %s634_s15, 1 }
   0xb   : > { %s1260_s17 = scalar_select %p1028_p3, 1, 0 }
   0xc   : > { %p1038_p6 = por %p1028_p3, %p88_p2  ;;  %p120_p7 = scmp.eq.s32.totalorder %s635_s16, 1 }
   0xd   : > { %p1042_p8 = por %p114_p5, %p82_p0  ;;  %p636_p9 = scmp.ge.s32.totalorder %s965_s14, 1 }
   0xe   : > { %s1262_s19 = scalar_select %p1038_p6, 1, 0 }
   0xf   : > { %s1263_s20 = scalar_select %p1042_p8, 1, 0 }
  0x10   : > { %p1047_p10 = por %p120_p7, %p88_p2  ;;  %p127_p11 = scmp.lt.s32.totalorder %s965_s14, 3 }
  0x11   : > { %s967_s23 = smov [#allocation3]   ;;  %p712_p1 = scmp.lt.s32.totalorder %s965_s14, 2 }
  0x12   : > { %s1264_s21 = scalar_select %p1047_p10, 1, 0 }
  0x13   : > { %p1052_p12 = pnand %p636_p9, %p127_p11  ;;  %s145_s24 = sshll.u32 %s967_s23, 4  ;;  %s1056_s24 = int_to_ptr.vmem [resolvable:$true] %s145_s24 }
  0x14   : > { %p1070_p2 = pnand %p712_p1, %p1032_p4  ;;  %s34_s27 = sadd.s32 1, %s961_s13 }
  0x15   : > { %s1265_s22 = scalar_select %p1052_p12, 1, 0 }
  0x16   : > { %p699_p13 = pneg %p1052_p12  ;;  %s821_s30 = scalar_lea.hbm %s1251_s0, 256 }
  0x17   : > { %s1267_s26 = scalar_select %p1070_p2, 1, 0 }
  0x18   : > { %p1064_p5 = pnand %p699_p13, %p1028_p3  ;;  %p822_p7 = scmp.ne.s32.totalorder %s1251_s0, %s821_s30 }
  0x19   : > { %p828_p4 = scmp.lt.u32.totalorder %s821_s30, %s1251_s0 }
  0x1a   : > { %p823_p9 = pneg %p1064_p5 }
  0x1c   : > { %p824_p11 = pnand %p823_p9, %p822_p7 }
  0x1e   : > { %p825_p13 = pneg %p824_p11 }
  0x20   : > { %p830_p1 = pnand %p828_p4, %p825_p13 }
  0x22   : > { %833 = shalt.err (!%p830_p1)
}
  0x23   : > { %s834_s7 = scalar_lea.vmem %s1056_s24, 256  ;;  %p842_p6 = scmp.lt.s32.totalorder %s1056_s24, %s1056_s24 }
  0x24   : > { %p835_p0 = scmp.ne.s32.totalorder %s1056_s24, %s834_s7  ;;  %p843_p3 = scmp.lt.s32.totalorder %s834_s7, %s834_s7 }
  0x26   : > { %p837_p10 = pnand %p835_p0, %p823_p9  ;;  %p844_p12 = por %p843_p3, %p842_p6 }
  0x28   : > { %p838_p8 = pneg %p837_p10 }
  0x2a   : > { %p845_p2 = pnand %p844_p12, %p838_p8 }
  0x2c   : > { %848 = shalt.err (!%p845_p2)
}
  0x2d   : > { %s968_s8 = smov 128   ;;  %s969_s15 = smov 8  }
  0x2e   : > { %702 = dma.hbm_to_vmem [thread:$0]  (!%p1064_p5), %s1251_s0, 256, %s1056_s24, [#allocation4], %s968_s8, %s968_s8, %s969_s15  }
  0x2f   : > { %p36_p3 = scmp.ge.s32.totalorder %s34_s27, 2  ;;  %s75_s23 = sadd.s32 1, %s953_s11 }
  0x30   : > { %s159_s28 = sand.u32 1, %s953_s11   ;;  %s687_s3 = sshll.u32 %s961_s13, 7 }
  0x31   : > { %s1281_s27 = smov (%p36_p3, %s34_s27), 0  ;;  %s639_s29 = sshll.u32 %s159_s28, 8 }
  0x32   : > { %s71_s30 = ssub.s32 %s961_s13, %s1281_s27  ;;  %s1109_s5 = scalar_lea.hbm %s1252_s1, %s687_s3 }
  0x33   : > { %p73_p6 = scmp.eq.s32.totalorder %s71_s30, 0  ;;  %s163_s24 = scalar_lea.vmem [#allocation6], %s639_s29 }
  0x34   : > { %s173_s6 = sshll.u32 %s163_s24, 4  ;;  %s1116_s16 = scalar_lea.sflag [#allocation7], %s159_s28  ;;  %s1114_s6 = int_to_ptr.vmem [resolvable:$true] %s173_s6 }
  0x35   : > { %s1112_s7 = scalar_select %p73_p6, %s953_s11, %s75_s23  }
  0x36   : > { %s849_s18 = scalar_lea.hbm %s1109_s5, 4096  ;;  %p1268_p10 = scmp.ne.s32.totalorder %s1267_s26, 0 }
  0x37   : > { %p850_p8 = scmp.ne.s32.totalorder %s1109_s5, %s849_s18  ;;  %s854_s25 = scalar_lea.hbm %s1252_s1, 8192 }
  0x38   : > { %p851_p12 = pneg %p1268_p10  ;;  %p855_p2 = scmp.lt.u32.totalorder %s1109_s5, %s1252_s1 }
  0x39   : > { %p856_p7 = scmp.lt.u32.totalorder %s854_s25, %s849_s18  ;;  %p858_p11 = scmp.lt.u32.totalorder %s849_s18, %s1109_s5 }
  0x3a   : > { %p852_p0 = pnand %p851_p12, %p850_p8 }
  0x3b   : > { %p857_p9 = por %p856_p7, %p855_p2 }
  0x3c   : > { %p853_p5 = pneg %p852_p0 }
  0x3d   : > { %p859_p13 = por %p858_p11, %p857_p9 }
  0x3f   : > { %p860_p4 = pnand %p859_p13, %p853_p5 }
  0x41   : > { %863 = shalt.err (!%p860_p4)
}
  0x42   : > { %s864_s23 = scalar_lea.vmem %s1114_s6, 4096  ;;  %s970_s28 = smov [#allocation6]  }
  0x43   : > { %p865_p1 = scmp.ne.s32.totalorder %s1114_s6, %s864_s23  ;;  %s869_s24 = sshll.u32 %s970_s28, 4  ;;  %s870_s24 = int_to_ptr.vmem [resolvable:$false] %s869_s24 }
  0x44   : > { %s871_s30 = scalar_lea.vmem %s870_s24, 8192  ;;  %p872_p8 = scmp.lt.s32.totalorder %s1114_s6, %s870_s24 }
  0x45   : > { %p867_p3 = pnand %p865_p1, %p851_p12  ;;  %p873_p0 = scmp.lt.s32.totalorder %s871_s30, %s864_s23 }
  0x47   : > { %p868_p6 = pneg %p867_p3  ;;  %p874_p2 = por %p873_p0, %p872_p8 }
  0x49   : > { %p875_p7 = pnand %p874_p2, %p868_p6 }
  0x4b   : > { %878 = shalt.err (!%p875_p7)
}
  0x4c   : > { %s971_s18 = smov 256   ;;  %p1269_p12 = scmp.ne.s32.totalorder %s1265_s22, 0 }
  0x4d   : > { %706 = dma.hbm_to_vmem [thread:$0]  (!%p1268_p10), %s1109_s5, 4096, %s1114_s6, %s1116_s16, %s971_s18, %s968_s8, %s969_s15  }
  0x4e   : > { %185 = sbr.rel (%p1269_p12) target bundleno = 388 (0x184), region = 28  ;;  %p1270_p5 = scmp.ne.s32.totalorder (!%p1269_p12), %s1260_s17, 0 }
  0x55   : > { %932 = dma.done.wait (%p1270_p5), [#allocation4], 256  }
  0x56   : > { %934 = vsyncadd (%p1270_p5), [#allocation4], 4294967040  ;;  %s1153_s3 = sand.u32 1, %s949_s10   ;;  %p1271_p10 = scmp.ne.s32.totalorder %s1262_s19, 0 }
  0x57   : > { %s644_s26 = sshll.u32 %s1153_s3, 8  ;;  %s192_s25 = scalar_lea.sflag [#allocation7], %s1153_s3 }
  0x58   : > { %s1157_s29 = scalar_lea.vmem [#allocation6], %s644_s26 }
  0x59   : > { %936 = dma.done.wait (%p1271_p10), %s192_s25, 4096  }
  0x5a   : > { %938 = vsyncadd (%p1271_p10), %s192_s25, 4294963200  ;;  %v770_v0 = vld [vmem:[%s1157_s29 + $0x4] ss:$8 sps:$4 sm:$0xff]   ;;  %v772_v1 = vld [vmem:[%s1157_s29] ss:$8 sps:$4 sm:$0xff]   ;;  %s645_s17 = sshll.u32 %s1153_s3, 4 }
  0x5b   : > { %438 = vmatprep.subr.bf16.mxu0 %v770_v0  ;;  %v773_v2 = vld [vmem:[%s1157_s29 + $0x14] ss:$8 sps:$4 sm:$0xff]   ;;  %v775_v3 = vld [vmem:[%s1157_s29 + $0x10] ss:$8 sps:$4 sm:$0xff]   ;;  %v776_v4 = vld [vmem:[%s1157_s29 + $0x24] ss:$8 sps:$4 sm:$0xff]  }
  0x5c   : > { %439 = vmatpush1.bf16.msra.mxu0 %v772_v1  ;;  %v778_v5 = vld [vmem:[%s1157_s29 + $0x20] ss:$8 sps:$4 sm:$0xff]   ;;  %v779_v6 = vld [vmem:[%s1157_s29 + $0x34] ss:$8 sps:$4 sm:$0xff]   ;;  %v781_v7 = vld [vmem:[%s1157_s29 + $0x30] ss:$8 sps:$4 sm:$0xff]  }
  0x5d   : > { %440 = vmatprep.subr.bf16.mxu0 %v773_v2  ;;  %v782_v8 = vld [vmem:[%s1157_s29 + $0x44] ss:$8 sps:$4 sm:$0xff]   ;;  %v784_v9 = vld [vmem:[%s1157_s29 + $0x40] ss:$8 sps:$4 sm:$0xff]   ;;  %v785_v10 = vld [vmem:[%s1157_s29 + $0x54] ss:$8 sps:$4 sm:$0xff]  }
  0x5e   : > { %v787_v11 = vld [vmem:[%s1157_s29 + $0x50] ss:$8 sps:$4 sm:$0xff]   ;;  %v788_v12 = vld [vmem:[%s1157_s29 + $0x64] ss:$8 sps:$4 sm:$0xff]   ;;  %v820_v13 = vld [vmem:[#allocation3 + $0x4] ss:$8 sps:$4 sm:$0xff]  }
  0x5f   : > { %v790_v14 = vld [vmem:[%s1157_s29 + $0x60] ss:$8 sps:$4 sm:$0xff]   ;;  %v791_v15 = vld [vmem:[%s1157_s29 + $0x74] ss:$8 sps:$4 sm:$0xff]   ;;  %470 = vmatprep.mubr.bf16.mxu0 %v820_v13  ;;  %v793_v16 = vld [vmem:[%s1157_s29 + $0x70] ss:$8 sps:$4 sm:$0xff]  }
  0x60   : > { %441 = vmatpush1.bf16.msra.mxu0 %v775_v3  ;;  %v794_v17 = vld [vmem:[%s1157_s29 + $0x84] ss:$8 sps:$4 sm:$0xff]   ;;  %v796_v18 = vld [vmem:[%s1157_s29 + $0x80] ss:$8 sps:$4 sm:$0xff]   ;;  %v797_v19 = vld [vmem:[%s1157_s29 + $0x94] ss:$8 sps:$4 sm:$0xff]  }
  0x61   : > { %442 = vmatprep.subr.bf16.mxu0 %v776_v4  ;;  %v799_v20 = vld [vmem:[%s1157_s29 + $0x90] ss:$8 sps:$4 sm:$0xff]   ;;  %v800_v21 = vld [vmem:[%s1157_s29 + $0xa4] ss:$8 sps:$4 sm:$0xff]   ;;  %v802_v22 = vld [vmem:[%s1157_s29 + $0xa0] ss:$8 sps:$4 sm:$0xff]  }
  0x62   : > { %v803_v23 = vld [vmem:[%s1157_s29 + $0xb4] ss:$8 sps:$4 sm:$0xff]   ;;  %v805_v24 = vld [vmem:[%s1157_s29 + $0xb0] ss:$8 sps:$4 sm:$0xff]   ;;  %v806_v25 = vld [vmem:[%s1157_s29 + $0xc4] ss:$8 sps:$4 sm:$0xff]  }
  0x63   : > { %v808_v26 = vld [vmem:[%s1157_s29 + $0xc0] ss:$8 sps:$4 sm:$0xff]   ;;  %v809_v27 = vld [vmem:[%s1157_s29 + $0xd4] ss:$8 sps:$4 sm:$0xff]   ;;  %v811_v28 = vld [vmem:[%s1157_s29 + $0xd0] ss:$8 sps:$4 sm:$0xff]  }
  0x64   : > { %443 = vmatpush1.bf16.msra.mxu0 %v778_v5  ;;  %v812_v29 = vld [vmem:[%s1157_s29 + $0xe4] ss:$8 sps:$4 sm:$0xff]   ;;  %v814_v30 = vld [vmem:[%s1157_s29 + $0xe0] ss:$8 sps:$4 sm:$0xff]   ;;  %v815_v31 = vld [vmem:[%s1157_s29 + $0xf4] ss:$8 sps:$4 sm:$0xff]  }
  0x65   : > { %444 = vmatprep.subr.bf16.mxu0 %v779_v6  ;;  %v817_v32 = vld [vmem:[%s1157_s29 + $0xf0] ss:$8 sps:$4 sm:$0xff]   ;;  %s215_s19 = scalar_lea.vmem [#allocation8], %s645_s17  ;;  %s690_s8 = sshll.u32 %s957_s12, 7 }
  0x66   : > { %v818_v33 = vld [vmem:[#allocation3] ss:$8 sps:$4 sm:$0xff]   ;;  %s527_s22 = sshll.u32 %s215_s19, 4  ;;  %s1202_s6 = scalar_lea.hbm %s1253_s2, %s690_s8  ;;  %s1197_s22 = int_to_ptr.vmem [resolvable:$true] %s527_s22 }
  0x67   : > { %s511_s16 = scalar_lea.sflag [#allocation5], %s1153_s3  ;;  %s879_s4 = scalar_lea.vmem %s1197_s22, 256 }
  0x68   : > { %445 = vmatpush1.bf16.msra.mxu0 %v781_v7  ;;  %p880_p9 = scmp.ne.s32.totalorder %s1197_s22, %s879_s4  ;;  %p1272_p11 = scmp.ne.s32.totalorder %s1263_s20, 0 }
  0x69   : > { %446 = vmatprep.subr.bf16.mxu0 %v782_v8  ;;  %s972_s12 = smov [#allocation8]  }
  0x6a   : > { %p881_p13 = pnand %p880_p9, %p1272_p11  ;;  %s883_s23 = sshll.u32 %s972_s12, 4  ;;  %s884_s23 = int_to_ptr.vmem [resolvable:$false] %s883_s23 }
  0x6b   : > { %s885_s28 = scalar_lea.vmem %s884_s23, 512  ;;  %p886_p1 = scmp.lt.s32.totalorder %s1197_s22, %s884_s23 }
  0x6c   : > { %447 = vmatpush1.bf16.msra.mxu0 %v784_v9  ;;  %p882_p4 = pneg %p881_p13  ;;  %p887_p3 = scmp.lt.s32.totalorder %s885_s28, %s879_s4 }
  0x6d   : > { %448 = vmatprep.subr.bf16.mxu0 %v785_v10 }
  0x6e   : > { %p888_p6 = por %p887_p3, %p886_p1 }
  0x70   : > { %449 = vmatpush1.bf16.msra.mxu0 %v787_v11  ;;  %p889_p8 = pnand %p888_p6, %p882_p4 }
  0x71   : > { %450 = vmatprep.subr.bf16.mxu0 %v788_v12 }
  0x74   : > { %451 = vmatpush1.bf16.msra.mxu0 %v790_v14 }
  0x75   : > { %452 = vmatprep.subr.bf16.mxu0 %v791_v15 }
  0x78   : > { %453 = vmatpush1.bf16.msra.mxu0 %v793_v16 }
  0x79   : > { %454 = vmatprep.subr.bf16.mxu0 %v794_v17 }
  0x7c   : > { %455 = vmatpush1.bf16.msra.mxu0 %v796_v18 }
  0x7d   : > { %456 = vmatprep.subr.bf16.mxu0 %v797_v19 }
  0x80   : > { %457 = vmatpush1.bf16.msra.mxu0 %v799_v20 }
  0x81   : > { %458 = vmatprep.subr.bf16.mxu0 %v800_v21 }
  0x84   : > { %459 = vmatpush1.bf16.msra.mxu0 %v802_v22 }
  0x85   : > { %460 = vmatprep.subr.bf16.mxu0 %v803_v23 }
  0x88   : > { %461 = vmatpush1.bf16.msra.mxu0 %v805_v24 }
  0x89   : > { %462 = vmatprep.subr.bf16.mxu0 %v806_v25 }
  0x8c   : > { %463 = vmatpush1.bf16.msra.mxu0 %v808_v26 }
  0x8d   : > { %464 = vmatprep.subr.bf16.mxu0 %v809_v27 }
  0x90   : > { %465 = vmatpush1.bf16.msra.mxu0 %v811_v28 }
  0x91   : > { %466 = vmatprep.subr.bf16.mxu0 %v812_v29 }
  0x94   : > { %467 = vmatpush1.bf16.msra.mxu0 %v814_v30 }
  0x95   : > { %468 = vmatprep.subr.bf16.mxu0 %v815_v31 }
  0x98   : > { %469 = vmatpush1.bf16.msra.mxu0 %v817_v32 }
  0x9b   : > { %471 = vmatmul.mubr.bf16.vlgmr.msra.gmra.mrb[0].mxu0 %v818_v33 }
 0x16e   : > { %v472_v34 = vpop.f32.mrb[0].mxu0 }
 0x16f   : > { %v474_v35 = vpop.f32.mrb[1].mxu0 }
 0x170   : > { %v688_v36 = vpack.c.bf16 %v474_v35, %v472_v34  ;;  %v476_v37 = vpop.f32.mrb[2].mxu0 }
 0x171   : > { %v478_v38 = vpop.f32.mrb[3].mxu0 }
 0x172   : > { %508 = vst [vmem:[%s215_s19] sm:$0xff] %v688_v36  ;;  %v689_v39 = vpack.c.bf16 %v478_v38, %v476_v37 }
 0x174   : > { %509 = vst [vmem:[%s215_s19 + $0x8] sm:$0xff] %v689_v39 }
 0x175   : > { %892 = shalt.err (!%p889_p8)
}
 0x176   : > { %s893_s24 = scalar_lea.hbm %s1202_s6, 256  ;;  %s897_s26 = scalar_lea.hbm %s1253_s2, 512 }
 0x177   : > { %p894_p0 = scmp.ne.s32.totalorder %s1202_s6, %s893_s24  ;;  %p898_p12 = scmp.lt.u32.totalorder %s1202_s6, %s1253_s2 }
 0x178   : > { %p899_p5 = scmp.lt.u32.totalorder %s897_s26, %s893_s24  ;;  %p901_p9 = scmp.lt.u32.totalorder %s893_s24, %s1202_s6 }
 0x179   : > { %p895_p2 = pnand %p894_p0, %p1272_p11 }
 0x17a   : > { %p900_p10 = por %p899_p5, %p898_p12 }
 0x17b   : > { %p896_p7 = pneg %p895_p2 }
 0x17c   : > { %p902_p13 = por %p901_p9, %p900_p10 }
 0x17e   : > { %p903_p4 = pnand %p902_p13, %p896_p7 }
 0x180   : > { %906 = shalt.err (!%p903_p4)
}
 0x181   : > { %s973_s17 = smov 128   ;;  %s974_s19 = smov 256  }
 0x182   : > { %s975_s8 = smov 8  }
 0x183   : > { %697 = dma.vmem_to_hbm [thread:$0]  (%p1272_p11), %s1197_s22, 256, %s1202_s6, %s511_s16, %s973_s17, %s974_s19, %s975_s8  }
 0x184 PF: > { %s542_s15 = sand.u32 1, %s945_s9   ;;  %p1273_p1 = scmp.ne.s32.totalorder %s1264_s21, 0 }
 0x185   : > { %p1274_p3 = scmp.ge.s32.totalorder %s965_s14, 2  ;;  %s543_s5 = scalar_lea.sflag [#allocation5], %s542_s15 }
 0x187   : > { %p708_p6 = pnand %p1274_p3, %p1273_p1 }
 0x189   : > { %940 = dma.done.wait (!%p708_p6), %s543_s5, 256  }
 0x18a   : > { %942 = vsyncadd (!%p708_p6), %s543_s5, 4294967040  ;;  %s19_s14 = sadd.s32 1, %s965_s14   ;;  %s1275_s9 = smov %s949_s10 }
 0x18b   : > { %p16_p8 = scmp.ge.s32.totalorder %s19_s14, 4   ;;  %s1276_s10 = smov %s953_s11 }
 0x18c   : > { %s1277_s11 = smov %s1112_s7  ;;  %s1278_s12 = smov %s961_s13 }
 0x18d   : > { %s1279_s13 = smov %s1281_s27  ;;  %18 = sbr.rel (!%p16_p8) target bundleno = 7 (0x7), region = 87 }
 0x194   :  { %548 = vsyncpa [#allocation4], 1 }
 0x195   :  { %550 = vsyncpa [#allocation4 + $0x1], 1 }
 0x196   :  { %551 = vsyncpa [#allocation7], 1 }
 0x197   :  { %553 = vsyncpa [#allocation7 + $0x1], 1 }
 0x198   :  { %554 = vsyncpa [#allocation5], 1 }
 0x199   :  { %556 = vsyncpa [#allocation5 + $0x1], 1 }

</bundles_post_ra>
